<compile_context>
chip_gen: v7x
topology: tpu7x:2x2x1
jax: 0.10.0
libtpu: 0.0.40
codegen_flags: <defaults>
</compile_context>

<pallas_src>
import jax
import jax.numpy as jnp
from jax.experimental import pallas as pl
from jax.experimental.pallas import tpu as pltpu


def _round_up(x, m):
    return ((x + m - 1) // m) * m


def _pick_batch_tile(B, F):
    """Batch tile: multiple of 16, sized against the VMEM double-buffer budget."""
    # Double-buffered f32 x tile + bf16 out tile; resident weights are tiny.
    budget = 40 << 20                                  # well under v7x's 64 MiB VMEM
    tb = (budget // (2 * F * (4 + 2))) // 16 * 16
    tb = max(16, min(tb, 32768))
    # Give v7x's two TensorCores >= ~4 grid steps when the batch is big enough,
    # but keep tiles >= 2048 rows so the ~0.35 us/step overhead stays amortized.
    if B >= 4 * 2048:
        tb = min(tb, max(2048, _round_up(pl.cdiv(B, 4), 16)))
    # Never exceed the (rounded-up) batch itself.
    tb = min(tb, _round_up(B, 16))
    return tb


def autoencoder_kernel(x_ref, w_enc_ref, b_enc_ref, w_dec_ref, b_dec_ref, o_ref):
    # In-kernel bf16 cast of the streamed x tile; f32 accumulation on the MXU.
    x = x_ref[...].astype(jnp.bfloat16)                              # [TB, F]
    h = jnp.dot(x, w_enc_ref[...].astype(jnp.bfloat16),
                preferred_element_type=jnp.float32)                  # [TB, H] f32
    h = jnp.maximum(h + b_enc_ref[...], 0.0)                         # bias + ReLU (VPU)
    y = jnp.dot(h.astype(jnp.bfloat16), w_dec_ref[...].astype(jnp.bfloat16),
                preferred_element_type=jnp.float32)                  # [TB, F] f32
    y = y + b_dec_ref[...]
    # Sigmoid via EUP exp; store bf16 (halves write traffic / vst count).
    o_ref[...] = jax.nn.sigmoid(y).astype(o_ref.dtype)


@jax.jit
def autoencoder_forward(x, w_enc, b_enc, w_dec, b_dec):
    """x: [B, input_size] float32. Returns [B, input_size] bfloat16."""
    B, F = x.shape
    H = w_enc.shape[1]

    tb = _pick_batch_tile(B, F)
    grid = (pl.cdiv(B, tb),)   # partial last block handled by masked writeback

    # VMEM budget: double-buffered x (f32) + out (bf16) tiles + resident
    # weights/biases, with headroom; capped under v7x's 64 MiB physical VMEM.
    tile_bytes = 2 * tb * F * 4 + 2 * tb * F * 2
    resident_bytes = 2 * F * H * 4 + (H + F) * 4
    vmem_limit = int(min(max(2 * (tile_bytes + resident_bytes), 16 << 20), 48 << 20))

    cost = pl.CostEstimate(
        flops=4 * B * F * H,                  # two matmuls: 2*M*K*N each
        transcendentals=B * F,                # sigmoid exp
        bytes_accessed=(B * F * 4             # x (f32, read once)
                        + B * F * 2           # out (bf16)
                        + 2 * F * H * 4       # weights (f32, resident)
                        + (H + F) * 4),       # biases (f32)
    )

    out = pl.pallas_call(
        autoencoder_kernel,
        out_shape=jax.ShapeDtypeStruct((B, F), jnp.bfloat16),
        grid=grid,
        in_specs=[
            pl.BlockSpec((tb, F), lambda i: (i, 0)),   # x: streamed batch tiles
            pl.BlockSpec((F, H), lambda i: (0, 0)),    # W_enc: VMEM-resident
            pl.BlockSpec((1, H), lambda i: (0, 0)),    # b_enc: VMEM-resident
            pl.BlockSpec((H, F), lambda i: (0, 0)),    # W_dec: VMEM-resident
            pl.BlockSpec((1, F), lambda i: (0, 0)),    # b_dec: VMEM-resident
        ],
        out_specs=pl.BlockSpec((tb, F), lambda i: (i, 0)),
        compiler_params=pltpu.CompilerParams(
            dimension_semantics=("parallel",),         # shard batch across TCs on v7x
            vmem_limit_bytes=vmem_limit,
        ),
        cost_estimate=cost,
    )(x, w_enc, b_enc, w_dec, b_dec)

    # NOTE: output lanes are F(<128)-wide so stores are still masked; a full
    # lane-dense repack would need B*F % 128 == 0 and was deemed too fragile
    # for arbitrary B at these toy feature counts.
    return out


def init_params(key, input_size, hidden_size):
    """Deterministic init mirroring nn.Linear's uniform(-1/sqrt(fan_in), 1/sqrt(fan_in))."""
    k1, k2, k3, k4 = jax.random.split(key, 4)
    bound_enc = 1.0 / (input_size ** 0.5)
    bound_dec = 1.0 / (hidden_size ** 0.5)
    # Stored as [in, out] (transpose of torch's [out, in]) for x @ W.
    w_enc = jax.random.uniform(k1, (input_size, hidden_size), jnp.float32,
                               -bound_enc, bound_enc)
    b_enc = jax.random.uniform(k2, (1, hidden_size), jnp.float32,
                               -bound_enc, bound_enc)
    w_dec = jax.random.uniform(k3, (hidden_size, input_size), jnp.float32,
                               -bound_dec, bound_dec)
    b_dec = jax.random.uniform(k4, (1, input_size), jnp.float32,
                               -bound_dec, bound_dec)
    return w_enc, b_enc, w_dec, b_dec


if __name__ == "__main__":
    hidden_size = 16
    input_size = 32   # stand-in for train_tensor.shape[1]
    batch = 64        # small demo batch (kernel tiles arbitrary B, incl. non-multiples)

    key = jax.random.PRNGKey(0)
    kx, kp = jax.random.split(key)
    x = jax.random.normal(kx, (batch, input_size), jnp.float32)
    w_enc, b_enc, w_dec, b_dec = init_params(kp, input_size, hidden_size)

    out = autoencoder_forward(x, w_enc, b_enc, w_dec, b_dec)
    out = jax.block_until_ready(out)

    # Pure-JAX f32 reference; bf16 matmul inputs + bf16 output => loosened tolerance.
    ref = jax.nn.sigmoid(jnp.maximum(x @ w_enc + b_enc, 0.0) @ w_dec + b_dec)
    assert out.shape == (batch, input_size)
    assert out.dtype == jnp.bfloat16
    err = float(jnp.max(jnp.abs(out.astype(jnp.float32) - ref)))
    assert err < 2e-2, err

    print("KERNEL_OK")
</pallas_src>

<mosaic_0001>
module attributes {stable_mosaic.version = 11 : i64} {
  func.func @autoencoder_kernel(%arg0: i32, %arg1: memref<64x32xf32, #tpu.memory_space<vmem>>, %arg2: memref<32x16xf32, #tpu.memory_space<vmem>>, %arg3: memref<1x16xf32, #tpu.memory_space<vmem>>, %arg4: memref<16x32xf32, #tpu.memory_space<vmem>>, %arg5: memref<1x32xf32, #tpu.memory_space<vmem>>, %arg6: memref<64x32xbf16, #tpu.memory_space<vmem>>) attributes {dimension_semantics = [#tpu.dimension_semantics<parallel>], iteration_bounds = array<i64: 1>, scalar_prefetch = 0 : i64, scratch_operands = 0 : i64, tpu.core_type = #tpu.core_type<tc>, window_params = [{transform_indices = @transform_0, window_bounds = array<i64: 64, 32>}, {pipeline_mode = #tpu.pipeline_mode<synchronous>, transform_indices = @transform_1, window_bounds = array<i64: 32, 16>}, {pipeline_mode = #tpu.pipeline_mode<synchronous>, transform_indices = @transform_2, window_bounds = array<i64: 1, 16>}, {pipeline_mode = #tpu.pipeline_mode<synchronous>, transform_indices = @transform_3, window_bounds = array<i64: 16, 32>}, {pipeline_mode = #tpu.pipeline_mode<synchronous>, transform_indices = @transform_4, window_bounds = array<i64: 1, 32>}, {transform_indices = @transform_5, window_bounds = array<i64: 64, 32>}]} {
    %c0 = arith.constant 0 : index
    %c0_0 = arith.constant 0 : index
    %0 = vector.load %arg1[%c0, %c0_0] : memref<64x32xf32, #tpu.memory_space<vmem>>, vector<64x32xf32>
    %1 = arith.truncf %0 : vector<64x32xf32> to vector<64x32xbf16>
    %c0_1 = arith.constant 0 : index
    %c0_2 = arith.constant 0 : index
    %2 = vector.load %arg2[%c0_1, %c0_2] : memref<32x16xf32, #tpu.memory_space<vmem>>, vector<32x16xf32>
    %3 = arith.truncf %2 : vector<32x16xf32> to vector<32x16xbf16>
    %cst = arith.constant dense<0.000000e+00> : vector<64x16xf32>
    %4 = tpu.matmul %1, %3, %cst {dimension_numbers = #tpu.dot_dimension_numbers<[1], [0], [0], [1], [0, 0, 1, 1], [], []>} : vector<64x32xbf16>, vector<32x16xbf16>, vector<64x16xf32> -> vector<64x16xf32>
    %c0_3 = arith.constant 0 : index
    %c0_4 = arith.constant 0 : index
    %5 = vector.load %arg3[%c0_3, %c0_4] : memref<1x16xf32, #tpu.memory_space<vmem>>, vector<1x16xf32>
    %6 = vector.broadcast %5 : vector<1x16xf32> to vector<64x16xf32>
    %7 = arith.addf %4, %6 : vector<64x16xf32>
    %cst_5 = arith.constant 0.000000e+00 : f32
    %8 = vector.broadcast %cst_5 : f32 to vector<64x16xf32>
    %9 = arith.maximumf %7, %8 : vector<64x16xf32>
    %10 = arith.truncf %9 : vector<64x16xf32> to vector<64x16xbf16>
    %c0_6 = arith.constant 0 : index
    %c0_7 = arith.constant 0 : index
    %11 = vector.load %arg4[%c0_6, %c0_7] : memref<16x32xf32, #tpu.memory_space<vmem>>, vector<16x32xf32>
    %12 = arith.truncf %11 : vector<16x32xf32> to vector<16x32xbf16>
    %cst_8 = arith.constant dense<0.000000e+00> : vector<64x32xf32>
    %13 = tpu.matmul %10, %12, %cst_8 {dimension_numbers = #tpu.dot_dimension_numbers<[1], [0], [0], [1], [0, 0, 1, 1], [], []>} : vector<64x16xbf16>, vector<16x32xbf16>, vector<64x32xf32> -> vector<64x32xf32>
    %c0_9 = arith.constant 0 : index
    %c0_10 = arith.constant 0 : index
    %14 = vector.load %arg5[%c0_9, %c0_10] : memref<1x32xf32, #tpu.memory_space<vmem>>, vector<1x32xf32>
    %15 = vector.broadcast %14 : vector<1x32xf32> to vector<64x32xf32>
    %16 = arith.addf %13, %15 : vector<64x32xf32>
    %17 = arith.negf %16 : vector<64x32xf32>
    %18 = math.exp %17 : vector<64x32xf32>
    %cst_11 = arith.constant 1.000000e+00 : f32
    %19 = vector.broadcast %cst_11 : f32 to vector<64x32xf32>
    %20 = arith.addf %19, %18 : vector<64x32xf32>
    %21 = arith.divf %19, %20 : vector<64x32xf32>
    %22 = arith.truncf %21 : vector<64x32xf32> to vector<64x32xbf16>
    %c0_12 = arith.constant 0 : index
    %c0_13 = arith.constant 0 : index
    %23 = vector.load %arg6[%c0_12, %c0_13] : memref<64x32xbf16, #tpu.memory_space<vmem>>, vector<64x32xbf16>
    tpu.vector_store %arg6[%c0_12, %c0_13], %22 {strides = array<i32>} : memref<64x32xbf16, #tpu.memory_space<vmem>>, vector<64x32xbf16>,
    return
  }
  func.func @transform_0(%arg0: i32) -> (i32, i32) {
    %c0_i32 = arith.constant 0 : i32
    %c0_i32_0 = arith.constant 0 : i32
    return %arg0, %c0_i32 : i32, i32
  }
  func.func @transform_1(%arg0: i32) -> (i32, i32) {
    %c0_i32 = arith.constant 0 : i32
    %c0_i32_0 = arith.constant 0 : i32
    %c0_i32_1 = arith.constant 0 : i32
    return %c0_i32, %c0_i32_0 : i32, i32
  }
  func.func @transform_2(%arg0: i32) -> (i32, i32) {
    %c0_i32 = arith.constant 0 : i32
    %c0_i32_0 = arith.constant 0 : i32
    %c0_i32_1 = arith.constant 0 : i32
    return %c0_i32, %c0_i32_0 : i32, i32
  }
  func.func @transform_3(%arg0: i32) -> (i32, i32) {
    %c0_i32 = arith.constant 0 : i32
    %c0_i32_0 = arith.constant 0 : i32
    %c0_i32_1 = arith.constant 0 : i32
    return %c0_i32, %c0_i32_0 : i32, i32
  }
  func.func @transform_4(%arg0: i32) -> (i32, i32) {
    %c0_i32 = arith.constant 0 : i32
    %c0_i32_0 = arith.constant 0 : i32
    %c0_i32_1 = arith.constant 0 : i32
    return %c0_i32, %c0_i32_0 : i32, i32
  }
  func.func @transform_5(%arg0: i32) -> (i32, i32) {
    %c0_i32 = arith.constant 0 : i32
    %c0_i32_0 = arith.constant 0 : i32
    return %arg0, %c0_i32 : i32, i32
  }
}

</mosaic_0001>

<bundles_post_ra>
// kernel: autoencoder_forward.1
= control target key start
LH: loop header
LB: loop body
LE: loop exit
PB: predicated region body
PF: predicated region fallthrough
CT: control target
= control target key end

     0   :  { %vm46_vm0 = vcmask 261120   ;;  %vm146_vm1 = vcmask 130048   ;;  %vm304_vm2 = vcmask 257024   ;;  %s534_s1 = inlined_call_operand.vmem [shape: f32[32,16], index: 1, kind: input, shape index: {}]   ;;  %s535_s0 = inlined_call_operand.vmem [shape: f32[64,32], index: 0, kind: input, shape index: {}]   ;;  %s536_s3 = inlined_call_operand.vmem [shape: f32[16,32], index: 3, kind: input, shape index: {}]   ;;  %s537_s2 = inlined_call_operand.vmem [shape: f32[1,16], index: 2, kind: input, shape index: {}]   ;;  %s538_s4 = inlined_call_operand.vmem [shape: f32[1,32], index: 4, kind: input, shape index: {}]   ;;  %s539_s5 = inlined_call_operand.vmem [shape: bf16[64,32], index: 5, kind: output, shape index: {}]  }
   0x1   :  { %v33_v0 = vld [vmem:[%s534_s1] sm:$0xff]  ;;  %v34_v1 = vld [vmem:[%s534_s1 + $0x8] sm:$0xff]  ;;  %v35_v2 = vld [vmem:[%s534_s1 + $0x10] sm:$0xff] }
   0x2   :  { %v37_v3 = vpack.c.bf16 %v34_v1, %v33_v0  ;;  %v36_v4 = vld [vmem:[%s534_s1 + $0x18] sm:$0xff]  ;;  %v21_v5 = vld [vmem:[%s535_s0] sm:$0xff]  ;;  %v22_v6 = vld [vmem:[%s535_s0 + $0x8] sm:$0xff] }
   0x3   :  { %v38_v7 = vpack.c.bf16 %v36_v4, %v35_v2  ;;  %v29_v8 = vpack.c.bf16 %v22_v6, %v21_v5  ;;  %v23_v9 = vld [vmem:[%s535_s0 + $0x10] sm:$0xff]  ;;  %v24_v10 = vld [vmem:[%s535_s0 + $0x18] sm:$0xff]  ;;  %v25_v11 = vld [vmem:[%s535_s0 + $0x20] sm:$0xff] }
   0x4   :  { %362 = vmatprep.subr.bf16.mxu0 %v37_v3  ;;  %v26_v12 = vld [vmem:[%s535_s0 + $0x28] sm:$0xff]  ;;  %v30_v13 = vpack.c.bf16 %v24_v10, %v23_v9  ;;  %v27_v15 = vld [vmem:[%s535_s0 + $0x30] sm:$0xff]  ;;  %v28_v16 = vld [vmem:[%s535_s0 + $0x38] sm:$0xff] }
   0x5   :  { %363 = vmatpush3.bf16.msra.mxu0 %v37_v3  ;;  %366 = vmatprep.mubr.msk.bf16.mxu0 %vm46_vm0, %v29_v8  ;;  %v31_v14 = vpack.c.bf16 %v26_v12, %v25_v11  ;;  %v32_v17 = vpack.c.bf16 %v28_v16, %v27_v15  ;;  %v136_v18 = vld [vmem:[%s536_s3] sm:$0xff]  ;;  %v137_v19 = vld [vmem:[%s536_s3 + $0x8] sm:$0xff] }
   0x6   :  { %364 = vmatprep.subr.bf16.mxu0 %v38_v7  ;;  %v138_v20 = vpack.c.bf16 %v137_v19, %v136_v18  ;;  %v317_v21 = vld [vmem:[%s537_s2] ss:$0 sm:$0xff] }
   0x7   :  { %v322_v50 = vld [vmem:[%s538_s4] ss:$0 sm:$0xff] }
   0x8   :  { %374 = vmatprep.subr.bf16.mxu1 %v138_v20 }
   0x9   :  { %365 = vmatpush3.bf16.msra.mxu0 %v38_v7  ;;  %375 = vmatpush3.bf16.msra.mxu1 %v138_v20 }
   0xc   :  { %367 = vmatmul.mubr.msk.bf16.vlgmr.msra.gmra.mrb[0].mxu0 %vm46_vm0, %v30_v13 }
   0xd   :  { %370 = vmatprep.mubr.msk.bf16.mxu0 %vm46_vm0, %v31_v14 }
  0x14   :  { %371 = vmatmul.mubr.msk.bf16.gmra.mrb[4].mxu0 %vm46_vm0, %v32_v17 }
  0xdf   :  { %v368_v22 = vpop.f32.mrb[0].mxu0 }
  0xe0   :  { %v102_v23 = vadd.f32 %v368_v22, %v317_v21  ;;  %v93_v24 = vpop.f32.mrb[1].mxu0 }
  0xe1   :  { %v94_v25 = vadd.f32 %v317_v21, %v93_v24  ;;  %v369_v26 = vpop.f32.mrb[2].mxu0 }
  0xe2   :  { %v105_v27 = vadd.f32 %v369_v26, %v317_v21  ;;  %v96_v28 = vpop.f32.mrb[3].mxu0  ;;  %v126_v30 = vmax.f32 %v102_v23, 0.0 }
  0xe3   :  { %v97_v29 = vadd.f32 %v317_v21, %v96_v28  ;;  %v124_v32 = vmax.f32 %v94_v25, 0.0 }
  0xe4   :  { %v127_v31 = vmax.f32 %v105_v27, 0.0 }
  0xe5   :  { %v125_v33 = vmax.f32 %v97_v29, 0.0 }
  0xe6   :  { %v133_v34 = vpack.c.bf16 %v127_v31, %v126_v30 }
  0xe7   :  { %v372_v35 = vpop.f32.mrb[4].mxu0  ;;  %v132_v36 = vpack.c.bf16 %v125_v33, %v124_v32 }
  0xe8   :  { %v118_v37 = vadd.f32 %v372_v35, %v317_v21  ;;  %v109_v38 = vpop.f32.mrb[5].mxu0 }
  0xe9   :  { %v110_v39 = vadd.f32 %v317_v21, %v109_v38  ;;  %v373_v40 = vpop.f32.mrb[6].mxu0  ;;  %376 = vmatprep.mubr.msk.bf16.mxu1 %vm146_vm1, %v132_v36 }
  0xea   :  { %v121_v41 = vadd.f32 %v373_v40, %v317_v21  ;;  %v112_v42 = vpop.f32.mrb[7].mxu0  ;;  %377 = vmatmul.mubr.msk.bf16.vlgmr.msra.gmra.mrb[0].mxu1 %vm146_vm1, %v133_v34  ;;  %v130_v44 = vmax.f32 %v118_v37, 0.0 }
  0xeb   :  { %v113_v43 = vadd.f32 %v317_v21, %v112_v42  ;;  %v128_v46 = vmax.f32 %v110_v39, 0.0 }
  0xec   :  { %v131_v45 = vmax.f32 %v121_v41, 0.0 }
  0xed   :  { %v129_v47 = vmax.f32 %v113_v43, 0.0 }
  0xee   :  { %v135_v48 = vpack.c.bf16 %v131_v45, %v130_v44 }
  0xef   :  { %v134_v49 = vpack.c.bf16 %v129_v47, %v128_v46 }
  0xf1   :  { %380 = vmatprep.mubr.msk.bf16.mxu1 %vm146_vm1, %v134_v49 }
  0xf2   :  { %381 = vmatmul.mubr.msk.bf16.gmra.mrb[4].mxu1 %vm146_vm1, %v135_v48 }
 0x1bd   :  { %v378_v51 = vpop.f32.mrb[0].mxu1 }
 0x1be   :  { %v202_v52 = vadd.f32 %v378_v51, %v322_v50  ;;  %v193_v53 = vpop.f32.mrb[1].mxu1 }
 0x1bf   :  { %v194_v54 = vadd.f32 %v322_v50, %v193_v53  ;;  %v379_v55 = vpop.f32.mrb[2].mxu1 }
 0x1c0   :  { %v329_v56 = vmul.f32 -1.442695, %v202_v52  ;;  %v205_v57 = vadd.f32 %v379_v55, %v322_v50  ;;  %v196_v58 = vpop.f32.mrb[3].mxu1 }
 0x1c1   :  { %v327_v59 = vmul.f32 -1.442695, %v194_v54  ;;  %v197_v60 = vadd.f32 %v322_v50, %v196_v58 }
 0x1c2   :  { %384 = vpow2.f32 %v329_v56  ;;  %v330_v61 = vmul.f32 -1.442695, %v205_v57 }
 0x1c3   :  { %386 = vpow2.f32 %v327_v59  ;;  %v328_v62 = vmul.f32 -1.442695, %v197_v60 }
 0x1c4   :  { %388 = vpow2.f32 %v330_v61 }
 0x1c5   :  { %390 = vpow2.f32 %v328_v62  ;;  %v382_v63 = vpop.f32.mrb[4].mxu1 }
 0x1c6   :  { %v218_v0 = vadd.f32 %v382_v63, %v322_v50  ;;  %v209_v1 = vpop.f32.mrb[5].mxu1 }
 0x1c7   :  { %v210_v2 = vadd.f32 %v322_v50, %v209_v1  ;;  %v383_v3 = vpop.f32.mrb[6].mxu1 }
 0x1c8   :  { %v333_v4 = vmul.f32 -1.442695, %v218_v0  ;;  %v221_v5 = vadd.f32 %v383_v3, %v322_v50  ;;  %v212_v6 = vpop.f32.mrb[7].mxu1 }
 0x1c9   :  { %v331_v7 = vmul.f32 -1.442695, %v210_v2  ;;  %v213_v8 = vadd.f32 %v322_v50, %v212_v6 }
 0x1ca   :  { %392 = vpow2.f32 %v333_v4  ;;  %v334_v9 = vmul.f32 -1.442695, %v221_v5 }
 0x1cb   :  { %394 = vpow2.f32 %v331_v7  ;;  %v332_v10 = vmul.f32 -1.442695, %v213_v8 }
 0x1cc   :  { %v385_v11 = vpop.eup %384  ;;  %396 = vpow2.f32 %v334_v9 }
 0x1cd   :  { %v387_v12 = vpop.eup %386  ;;  %v250_v13 = vadd.f32 1.0, %v385_v11  ;;  %398 = vpow2.f32 %v332_v10 }
 0x1ce   :  { %v389_v14 = vpop.eup %388  ;;  %v248_v15 = vadd.f32 1.0, %v387_v12 }
 0x1cf   :  { %v391_v16 = vpop.eup %390  ;;  %400 = vrcp.f32 %v250_v13  ;;  %v251_v17 = vadd.f32 1.0, %v389_v14 }
 0x1d0   :  { %402 = vrcp.f32 %v248_v15  ;;  %v249_v18 = vadd.f32 1.0, %v391_v16 }
 0x1d1   :  { %404 = vrcp.f32 %v251_v17 }
 0x1d2   :  { %406 = vrcp.f32 %v249_v18 }
 0x1d4   :  { %v393_v19 = vpop.eup %392 }
 0x1d5   :  { %v395_v20 = vpop.eup %394  ;;  %v254_v21 = vadd.f32 1.0, %v393_v19 }
 0x1d6   :  { %v397_v22 = vpop.eup %396  ;;  %v252_v23 = vadd.f32 1.0, %v395_v20 }
 0x1d7   :  { %v399_v24 = vpop.eup %398  ;;  %408 = vrcp.f32 %v254_v21  ;;  %v255_v25 = vadd.f32 1.0, %v397_v22 }
 0x1d8   :  { %410 = vrcp.f32 %v252_v23  ;;  %v253_v26 = vadd.f32 1.0, %v399_v24 }
 0x1d9   :  { %v401_v27 = vpop.eup %400  ;;  %412 = vrcp.f32 %v255_v25 }
 0x1da   :  { %v403_v28 = vpop.eup %402  ;;  %v345_v29 = vpack.c.bf16 %v401_v27, %v401_v27  ;;  %414 = vrcp.f32 %v253_v26 }
 0x1db   :  { %v405_v30 = vpop.eup %404  ;;  %v343_v31 = vpack.c.bf16 %v403_v28, %v403_v28 }
 0x1dc   :  { %v407_v32 = vpop.eup %406  ;;  %307 = vst.msk [vmem:[%s539_s5 + $0x8] sm:$0xf] %vm304_vm2, %v345_v29  ;;  %v346_v33 = vpack.c.bf16 %v405_v30, %v405_v30 }
 0x1dd   :  { %305 = vst.msk [vmem:[%s539_s5] sm:$0xf] %vm304_vm2, %v343_v31  ;;  %v344_v34 = vpack.c.bf16 %v407_v32, %v407_v32 }
 0x1de   :  { %308 = vst.msk [vmem:[%s539_s5 + $0xc] sm:$0xf] %vm304_vm2, %v346_v33 }
 0x1df   :  { %306 = vst.msk [vmem:[%s539_s5 + $0x4] sm:$0xf] %vm304_vm2, %v344_v34 }
 0x1e1   :  { %v409_v35 = vpop.eup %408 }
 0x1e2   :  { %v411_v36 = vpop.eup %410  ;;  %v349_v37 = vpack.c.bf16 %v409_v35, %v409_v35 }
 0x1e3   :  { %v413_v38 = vpop.eup %412  ;;  %v347_v39 = vpack.c.bf16 %v411_v36, %v411_v36 }
 0x1e4   :  { %v415_v40 = vpop.eup %414  ;;  %311 = vst.msk [vmem:[%s539_s5 + $0x18] sm:$0xf] %vm304_vm2, %v349_v37  ;;  %v350_v41 = vpack.c.bf16 %v413_v38, %v413_v38 }
 0x1e5   :  { %309 = vst.msk [vmem:[%s539_s5 + $0x10] sm:$0xf] %vm304_vm2, %v347_v39  ;;  %v348_v42 = vpack.c.bf16 %v415_v40, %v415_v40 }
 0x1e6   :  { %312 = vst.msk [vmem:[%s539_s5 + $0x1c] sm:$0xf] %vm304_vm2, %v350_v41 }
 0x1e7   :  { %310 = vst.msk [vmem:[%s539_s5 + $0x14] sm:$0xf] %vm304_vm2, %v348_v42 }

</bundles_post_ra>
